<compile_context>
chip_gen: v7x
topology: tpu7x:2x2x1
jax: 0.10.0
libtpu: 0.0.40
codegen_flags: <defaults>
</compile_context>

<pallas_src>
import jax
import jax.numpy as jnp
import numpy as np
from jax.experimental import pallas as pl
from jax.experimental.pallas import tpu as pltpu


def evaluate_kernel(x_ref, w_ref, b_ref, o_ref):
    # x_ref : (A*D, TB)        input tile, batch on the lane axis
    # w_ref : (A*(O+3), A*D)   block-diagonal fused weights (resident)
    # b_ref : (A*(O+3), 1)     fused bias column
    # o_ref : (O, TB)          lane-dense output scores
    O, TB = o_ref.shape
    A = w_ref.shape[0] // (O + 3)

    # One MXU matmul for all four linear layers of all A agents (K = A*D).
    fused = jnp.dot(w_ref[...], x_ref[...],
                    preferred_element_type=jnp.float32) + b_ref[...]      # (A*(O+3), TB)

    # Row layout (all slice boundaries sublane-aligned, A = 8):
    #   rows [0, O*A)           : ind, row o*A + a
    #   rows [O*A, O*A+A)       : q per agent
    #   rows [O*A+A, O*A+2A)    : k per agent
    #   rows [O*A+2A, O*A+3A)   : v per agent (out_proj scale/bias folded in)
    ind = fused[:O * A, :].reshape(O, A, TB)                               # (O, A, TB)
    q = fused[O * A:O * A + A, :]                                          # (A, TB)
    k = fused[O * A + A:O * A + 2 * A, :]                                  # (A, TB)
    v = fused[O * A + 2 * A:O * A + 3 * A, :]                              # (A, TB)

    # Attention scores (embed_dim = head_dim = 1 -> scale 1): pure VPU broadcast,
    # s[i, j, t] = q[i, t] * k[j, t].  No micro-matmuls.
    s = q[:, None, :] * k[None, :, :]                                      # (A, A, TB)
    s = s - jnp.max(s, axis=1, keepdims=True)
    e = jnp.exp(s)
    attn = e / jnp.sum(e, axis=1, keepdims=True)                           # softmax over j

    # out[i, t] = sum_j attn[i, j, t] * v[j, t]
    out = jnp.sum(attn * v[None, :, :], axis=1)                            # (A, TB)

    # Softmax over agents (torch: softmax(out.squeeze(-1), -1)).
    m = out - jnp.max(out, axis=0, keepdims=True)
    em = jnp.exp(m)
    w = em / jnp.sum(em, axis=0, keepdims=True)                            # (A, TB)

    # score[o, t] = sum_a ind[o, a, t] * w[a, t]   -> already lane-dense (O, TB)
    o_ref[...] = jnp.sum(ind * w[None, :, :], axis=1)


def evaluate_forward(x, W_eval, b_eval, Wq, bq, Wk, bk, Wv, bv,
                     in_proj_w, in_proj_b, out_proj_w, out_proj_b,
                     *, max_tb=512, x_dtype=jnp.float32, use_core_parallel=False):
    B, A, D = x.shape
    O = W_eval.shape[0]
    f32 = jnp.float32

    # ---- host-side folding of the MHA scalars into the q/k/v linears (exact) ----
    wq_in, wk_in, wv_in = in_proj_w[0, 0], in_proj_w[1, 0], in_proj_w[2, 0]
    bq_in, bk_in, bv_in = in_proj_b[0], in_proj_b[1], in_proj_b[2]
    w_out, b_out = out_proj_w[0, 0], out_proj_b[0]

    Wq_f, bq_f = Wq[0] * wq_in, bq[0] * wq_in + bq_in
    Wk_f, bk_f = Wk[0] * wk_in, bk[0] * wk_in + bk_in
    Wv_f = Wv[0] * (wv_in * w_out)
    # attention rows sum to 1, so the out_proj bias folds exactly into the v bias
    bv_f = (bv[0] * wv_in + bv_in) * w_out + b_out

    # ---- block-diagonal fused weight (A*(O+3), A*D) and bias column ----
    E = jnp.eye(A, dtype=f32)
    ind_blk = (W_eval.astype(f32)[:, None, None, :]
               * E[None, :, :, None]).reshape(O * A, A * D)

    def diag_row(wrow):  # (D,) -> (A, A*D) block-diagonal replication
        return (E[:, :, None] * wrow.astype(f32)[None, None, :]).reshape(A, A * D)

    W_block = jnp.concatenate(
        [ind_blk, diag_row(Wq_f), diag_row(Wk_f), diag_row(Wv_f)], axis=0)      # (A*(O+3), A*D)
    b_block = jnp.concatenate([
        jnp.broadcast_to(b_eval.astype(f32)[:, None], (O, A)).reshape(O * A),
        jnp.full((A,), bq_f, dtype=f32),
        jnp.full((A,), bk_f, dtype=f32),
        jnp.full((A,), bv_f, dtype=f32),
    ])[:, None]                                                                 # (A*(O+3), 1)

    # ---- batch tiling: batch on the lane axis, TB a multiple of 128 ----
    TB = int(min(max_tb, 128 * pl.cdiv(B, 128)))   # small-B fast path: one grid step
    G = int(pl.cdiv(B, TB))
    B_pad = G * TB
    x_p = x if B_pad == B else jnp.pad(x, ((0, B_pad - B), (0, 0), (0, 0)))
    x2d = x_p.reshape(B_pad, A * D).T.astype(x_dtype)          # (A*D, B_pad), batch on lanes
    W_blk = W_block.astype(x_dtype)

    cost = pl.CostEstimate(
        flops=int(B_pad * (2 * A * (O + 3) * A * D + 6 * A * A + 2 * A * O + 6 * A)),
        transcendentals=int(B_pad * A * (A + 1)),
        bytes_accessed=int(x2d.dtype.itemsize * x2d.size
                           + W_blk.dtype.itemsize * W_blk.size
                           + 4 * (b_block.size + O * B_pad)),
    )

    # v7x: set use_core_parallel=True (and keep G even) to shard the batch axis
    # across both TensorCores; plain "parallel" elsewhere.
    sem = (pltpu.CORE_PARALLEL,) if use_core_parallel else ("parallel",)

    out = pl.pallas_call(
        evaluate_kernel,
        out_shape=jax.ShapeDtypeStruct((O, B_pad), f32),
        grid_spec=pltpu.PrefetchScalarGridSpec(
            num_scalar_prefetch=0,
            grid=(G,),
            in_specs=[
                pl.BlockSpec((A * D, TB), lambda g: (0, g)),           # batch tile
                pl.BlockSpec((A * (O + 3), A * D), lambda g: (0, 0)),  # fused weights
                pl.BlockSpec((A * (O + 3), 1), lambda g: (0, 0)),      # fused bias
            ],
            out_specs=pl.BlockSpec((O, TB), lambda g: (0, g)),
        ),
        compiler_params=pltpu.CompilerParams(
            dimension_semantics=sem,
            vmem_limit_bytes=32 * 1024 * 1024),
        cost_estimate=cost,
    )(x2d, W_blk, b_block)

    # (O, B_pad) -> (B, O)
    return out.T[:B]


def reference_forward(x, W_eval, b_eval, Wq, bq, Wk, bk, Wv, bv,
                      in_proj_w, in_proj_b, out_proj_w, out_proj_b):
    """Pure-JAX reference mirroring the PyTorch forward (no folding/fusing)."""
    ind = jnp.einsum('bad,od->bao', x, W_eval) + b_eval           # (B, A, O)
    q = jnp.einsum('bad,ed->bae', x, Wq) + bq                     # (B, A, 1)
    k = jnp.einsum('bad,ed->bae', x, Wk) + bk
    v = jnp.einsum('bad,ed->bae', x, Wv) + bv
    q2 = q * in_proj_w[0, 0] + in_proj_b[0]
    k2 = k * in_proj_w[1, 0] + in_proj_b[1]
    v2 = v * in_proj_w[2, 0] + in_proj_b[2]
    s = jnp.einsum('bie,bje->bij', q2, k2)                        # scale = 1/sqrt(1) = 1
    attn = jax.nn.softmax(s, axis=-1)
    o = jnp.einsum('bij,bje->bie', attn, v2)
    o = o * out_proj_w[0, 0] + out_proj_b[0]
    mh = jax.nn.softmax(o[..., 0], axis=-1)                       # (B, A)
    return jnp.einsum('bao,ba->bo', ind, mh)                      # (B, O)


if __name__ == "__main__":
    # Shapes consistent with the module: n_agents=8, input_size=32, output_size=4
    # (embedding_size=1, num_heads=1 are fixed by Evaluate_module).
    A, D, O = 8, 32, 4

    key = jax.random.PRNGKey(0)
    ks = jax.random.split(key, 16)
    f32 = jnp.float32

    # evaluate_net: Linear(D, O)
    W_eval = jax.random.normal(ks[1], (O, D), dtype=f32) * 0.1
    b_eval = jax.random.normal(ks[2], (O,), dtype=f32) * 0.1
    # q_net / k_net / v_net: Linear(D, 1)
    Wq = jax.random.normal(ks[3], (1, D), dtype=f32) * 0.1
    bq = jax.random.normal(ks[4], (1,), dtype=f32) * 0.1
    Wk = jax.random.normal(ks[5], (1, D), dtype=f32) * 0.1
    bk = jax.random.normal(ks[6], (1,), dtype=f32) * 0.1
    Wv = jax.random.normal(ks[7], (1, D), dtype=f32) * 0.1
    bv = jax.random.normal(ks[8], (1,), dtype=f32) * 0.1
    # nn.MultiheadAttention(embed_dim=1, num_heads=1) parameters
    in_proj_w = jax.random.normal(ks[9], (3, 1), dtype=f32) * 0.5
    in_proj_b = jax.random.normal(ks[10], (3,), dtype=f32) * 0.1
    out_proj_w = jax.random.normal(ks[11], (1, 1), dtype=f32) * 0.5
    out_proj_b = jax.random.normal(ks[12], (1,), dtype=f32) * 0.1

    params = (W_eval, b_eval, Wq, bq, Wk, bk, Wv, bv,
              in_proj_w, in_proj_b, out_proj_w, out_proj_b)

    # B=16 and B=3: small-batch single-step path (TB=128, G=1, padded batch).
    # B=700: multi-step path (TB=512, G=2, padded to 1024).
    for B, xk in ((16, ks[0]), (3, ks[13]), (700, ks[14])):
        x = jax.random.normal(xk, (B, A, D), dtype=f32)
        out = jax.block_until_ready(evaluate_forward(x, *params))
        ref = reference_forward(x, *params)
        np.testing.assert_allclose(np.asarray(out), np.asarray(ref), rtol=1e-5, atol=1e-5)

    # TODO(synk): optimizer / replay buffer / supervise_train are host-side training
    # utilities with no kernel equivalent; only the forward pass is implemented.
    print("KERNEL_OK")
</pallas_src>

<mosaic_0001>
module attributes {stable_mosaic.version = 11 : i64} {
  func.func @evaluate_kernel(%arg0: i32, %arg1: memref<256x128xf32, #tpu.memory_space<vmem>>, %arg2: memref<56x256xf32, #tpu.memory_space<vmem>>, %arg3: memref<56x1xf32, #tpu.memory_space<vmem>>, %arg4: memref<4x128xf32, #tpu.memory_space<vmem>>) attributes {dimension_semantics = [#tpu.dimension_semantics<parallel>], iteration_bounds = array<i64: 1>, scalar_prefetch = 0 : i64, scratch_operands = 0 : i64, tpu.core_type = #tpu.core_type<tc>, window_params = [{transform_indices = @transform_0, window_bounds = array<i64: 256, 128>}, {pipeline_mode = #tpu.pipeline_mode<synchronous>, transform_indices = @transform_1, window_bounds = array<i64: 56, 256>}, {pipeline_mode = #tpu.pipeline_mode<synchronous>, transform_indices = @transform_2, window_bounds = array<i64: 56, 1>}, {transform_indices = @transform_3, window_bounds = array<i64: 4, 128>}]} {
    %c0 = arith.constant 0 : index
    %c0_0 = arith.constant 0 : index
    %0 = vector.load %arg2[%c0, %c0_0] : memref<56x256xf32, #tpu.memory_space<vmem>>, vector<56x256xf32>
    %c0_1 = arith.constant 0 : index
    %c0_2 = arith.constant 0 : index
    %1 = vector.load %arg1[%c0_1, %c0_2] : memref<256x128xf32, #tpu.memory_space<vmem>>, vector<256x128xf32>
    %cst = arith.constant dense<0.000000e+00> : vector<56x128xf32>
    %2 = tpu.matmul %0, %1, %cst {dimension_numbers = #tpu.dot_dimension_numbers<[1], [0], [0], [1], [0, 0, 1, 1], [], []>} : vector<56x256xf32>, vector<256x128xf32>, vector<56x128xf32> -> vector<56x128xf32>
    %c0_3 = arith.constant 0 : index
    %c0_4 = arith.constant 0 : index
    %3 = vector.load %arg3[%c0_3, %c0_4] : memref<56x1xf32, #tpu.memory_space<vmem>>, vector<56x1xf32>
    %4 = vector.broadcast %3 : vector<56x1xf32> to vector<56x128xf32>
    %5 = arith.addf %2, %4 : vector<56x128xf32>
    %6 = vector.extract_strided_slice %5 {offsets = [0, 0], sizes = [32, 128], strides = [1, 1]} : vector<56x128xf32> to vector<32x128xf32>
    %7 = vector.shape_cast %6 : vector<32x128xf32> to vector<4x8x128xf32>
    %8 = vector.extract_strided_slice %5 {offsets = [32, 0], sizes = [8, 128], strides = [1, 1]} : vector<56x128xf32> to vector<8x128xf32>
    %9 = vector.extract_strided_slice %5 {offsets = [40, 0], sizes = [8, 128], strides = [1, 1]} : vector<56x128xf32> to vector<8x128xf32>
    %10 = vector.extract_strided_slice %5 {offsets = [48, 0], sizes = [8, 128], strides = [1, 1]} : vector<56x128xf32> to vector<8x128xf32>
    %11 = vector.shape_cast %8 : vector<8x128xf32> to vector<8x1x128xf32>
    %12 = vector.shape_cast %9 : vector<8x128xf32> to vector<1x8x128xf32>
    %13 = vector.broadcast %11 : vector<8x1x128xf32> to vector<8x8x128xf32>
    %14 = vector.broadcast %12 : vector<1x8x128xf32> to vector<8x8x128xf32>
    %15 = arith.mulf %13, %14 : vector<8x8x128xf32>
    %cst_5 = arith.constant dense<0xFF800000> : vector<8x128xf32>
    %16 = vector.multi_reduction <maximumf>, %15, %cst_5 [1] : vector<8x8x128xf32> to vector<8x128xf32>
    %17 = vector.shape_cast %16 : vector<8x128xf32> to vector<8x1x128xf32>
    %18 = vector.broadcast %17 : vector<8x1x128xf32> to vector<8x8x128xf32>
    %19 = arith.subf %15, %18 : vector<8x8x128xf32>
    %20 = math.exp %19 : vector<8x8x128xf32>
    %cst_6 = arith.constant dense<0.000000e+00> : vector<8x128xf32>
    %21 = vector.multi_reduction <add>, %20, %cst_6 [1] : vector<8x8x128xf32> to vector<8x128xf32>
    %22 = vector.shape_cast %21 : vector<8x128xf32> to vector<8x1x128xf32>
    %23 = vector.broadcast %22 : vector<8x1x128xf32> to vector<8x8x128xf32>
    %24 = arith.divf %20, %23 : vector<8x8x128xf32>
    %25 = vector.shape_cast %10 : vector<8x128xf32> to vector<1x8x128xf32>
    %26 = vector.broadcast %25 : vector<1x8x128xf32> to vector<8x8x128xf32>
    %27 = arith.mulf %24, %26 : vector<8x8x128xf32>
    %cst_7 = arith.constant dense<0.000000e+00> : vector<8x128xf32>
    %28 = vector.multi_reduction <add>, %27, %cst_7 [1] : vector<8x8x128xf32> to vector<8x128xf32>
    %cst_8 = arith.constant dense<0xFF800000> : vector<128xf32>
    %29 = vector.multi_reduction <maximumf>, %28, %cst_8 [0] : vector<8x128xf32> to vector<128xf32>
    %30 = vector.shape_cast %29 : vector<128xf32> to vector<1x128xf32>
    %31 = vector.broadcast %30 : vector<1x128xf32> to vector<8x128xf32>
    %32 = arith.subf %28, %31 : vector<8x128xf32>
    %33 = math.exp %32 : vector<8x128xf32>
    %cst_9 = arith.constant dense<0.000000e+00> : vector<128xf32>
    %34 = vector.multi_reduction <add>, %33, %cst_9 [0] : vector<8x128xf32> to vector<128xf32>
    %35 = vector.shape_cast %34 : vector<128xf32> to vector<1x128xf32>
    %36 = vector.broadcast %35 : vector<1x128xf32> to vector<8x128xf32>
    %37 = arith.divf %33, %36 : vector<8x128xf32>
    %38 = vector.shape_cast %37 : vector<8x128xf32> to vector<1x8x128xf32>
    %39 = vector.broadcast %38 : vector<1x8x128xf32> to vector<4x8x128xf32>
    %40 = arith.mulf %7, %39 : vector<4x8x128xf32>
    %cst_10 = arith.constant dense<0.000000e+00> : vector<4x128xf32>
    %41 = vector.multi_reduction <add>, %40, %cst_10 [1] : vector<4x8x128xf32> to vector<4x128xf32>
    %c0_11 = arith.constant 0 : index
    %c0_12 = arith.constant 0 : index
    %42 = vector.load %arg4[%c0_11, %c0_12] : memref<4x128xf32, #tpu.memory_space<vmem>>, vector<4x128xf32>
    tpu.vector_store %arg4[%c0_11, %c0_12], %41 {strides = array<i32>} : memref<4x128xf32, #tpu.memory_space<vmem>>, vector<4x128xf32>,
    return
  }
  func.func @transform_0(%arg0: i32) -> (i32, i32) {
    %c0_i32 = arith.constant 0 : i32
    %c0_i32_0 = arith.constant 0 : i32
    return %c0_i32, %arg0 : i32, i32
  }
  func.func @transform_1(%arg0: i32) -> (i32, i32) {
    %c0_i32 = arith.constant 0 : i32
    %c0_i32_0 = arith.constant 0 : i32
    %c0_i32_1 = arith.constant 0 : i32
    return %c0_i32, %c0_i32_0 : i32, i32
  }
  func.func @transform_2(%arg0: i32) -> (i32, i32) {
    %c0_i32 = arith.constant 0 : i32
    %c0_i32_0 = arith.constant 0 : i32
    %c0_i32_1 = arith.constant 0 : i32
    return %c0_i32, %c0_i32_0 : i32, i32
  }
  func.func @transform_3(%arg0: i32) -> (i32, i32) {
    %c0_i32 = arith.constant 0 : i32
    %c0_i32_0 = arith.constant 0 : i32
    return %c0_i32, %arg0 : i32, i32
  }
}

</mosaic_0001>

<bundles_post_ra>
// kernel: tpu_custom_call.1
= control target key start
LH: loop header
LB: loop body
LE: loop exit
PB: predicated region body
PF: predicated region fallthrough
CT: control target
= control target key end

     0   :  { %8 = vsyncpa [#allocation3], 0  ;;  %s1126_s0 = inlined_call_operand.hbm [shape: f32[256,128], index: 0, kind: input, shape index: {}]   ;;  %s1127_s1 = inlined_call_operand.hbm [shape: f32[56,256], index: 1, kind: input, shape index: {}]   ;;  %s1128_s2 = inlined_call_operand.vmem [shape: f32[56,1], index: 2, kind: input, shape index: {}]   ;;  %s1129_s3 = inlined_call_operand.hbm [shape: f32[4,128], index: 3, kind: output, shape index: {}]  }
   0x1   :  { %9 = vsyncpa [#allocation6], 0 }
   0x2   :  { %10 = vsyncpa [#allocation4], 0  ;;  %s911_s12 = smov [#allocation2]   ;;  %s839_s16 = scalar_lea.hbm %s1126_s0, 4096 }
   0x3   :  { %s16_s13 = sshll.u32 %s911_s12, 4  ;;  %p840_p0 = scmp.ne.s32.totalorder %s1126_s0, %s839_s16  ;;  %s17_s13 = int_to_ptr.vmem [resolvable:$true] %s16_s13 }
   0x4   :  { %p843_p1 = scmp.lt.u32.totalorder %s839_s16, %s1126_s0 }
   0x6   :  { %p845_p2 = pnand %p843_p1, %p840_p0 }
   0x8   :  { %848 = shalt.err (!%p845_p2)
}
   0x9   :  { %s849_s21 = scalar_lea.vmem %s17_s13, 4096  ;;  %p854_p4 = scmp.lt.s32.totalorder %s17_s13, %s17_s13 }
   0xa   :  { %p850_p3 = scmp.ne.s32.totalorder %s17_s13, %s849_s21  ;;  %p855_p5 = scmp.lt.s32.totalorder %s849_s21, %s849_s21 }
   0xc   :  { %p856_p6 = por %p855_p5, %p854_p4 }
   0xe   :  { %p857_p7 = pnand %p856_p6, %p850_p3 }
  0x10   :  { %860 = shalt.err (!%p857_p7)
}
  0x11   :  { %s912_s22 = smov 128   ;;  %s913_s23 = smov 8  }
  0x12   :  { %22 = dma.hbm_to_vmem [thread:$0]  %s1126_s0, 4096, %s17_s13, [#allocation3], %s912_s22, %s912_s22, %s913_s23  }
  0x13   :  { %s914_s26 = smov [#allocation5]   ;;  %s861_s30 = scalar_lea.hbm %s1127_s1, 1792 }
  0x14   :  { %s28_s27 = sshll.u32 %s914_s26, 4  ;;  %p862_p8 = scmp.ne.s32.totalorder %s1127_s1, %s861_s30  ;;  %s29_s27 = int_to_ptr.vmem [resolvable:$true] %s28_s27 }
  0x15   :  { %p865_p9 = scmp.lt.u32.totalorder %s861_s30, %s1127_s1 }
  0x17   :  { %p867_p10 = pnand %p865_p9, %p862_p8 }
  0x19   :  { %870 = shalt.err (!%p867_p10)
}
  0x1a   :  { %s871_s8 = scalar_lea.vmem %s29_s27, 1792  ;;  %p876_p12 = scmp.lt.s32.totalorder %s29_s27, %s29_s27 }
  0x1b   :  { %p872_p11 = scmp.ne.s32.totalorder %s29_s27, %s871_s8  ;;  %p877_p13 = scmp.lt.s32.totalorder %s871_s8, %s871_s8 }
  0x1d   :  { %p878_p0 = por %p877_p13, %p876_p12 }
  0x1f   :  { %p879_p1 = pnand %p878_p0, %p872_p11 }
  0x21   :  { %882 = shalt.err (!%p879_p1)
}
  0x22   :  { %s915_s0 = smov 256   ;;  %s916_s9 = smov 16  }
  0x23   :  { %34 = dma.hbm_to_vmem [thread:$0]  %s1127_s1, 1792, %s29_s27, [#allocation6], %s915_s0, %s915_s0, %s916_s9  }
  0x24   :  { %905 = dma.done.wait [#allocation3], 4096  }
  0x25   :  { %906 = vsyncadd [#allocation3], 4294963200 }
  0x26   :  { %907 = dma.done.wait [#allocation6], 1792  }
  0x27   :  { %908 = vsyncadd [#allocation6], 4294965504  ;;  %v917_v0 = vmov 0   ;;  %v73_v1 = vld [vmem:[#allocation2 + $0x80] sm:$0xff]  ;;  %v74_v2 = vld [vmem:[#allocation2 + $0x88] sm:$0xff]  ;;  %vm561_vm0 = vcmask 1041409  }
  0x28   :  { %787 = vset.pattern.permute.xlu0 %v917_v0  ;;  %788 = vset.pattern.permute.xlu1 %v917_v0  ;;  %v57_v3 = vld [vmem:[#allocation2] sm:$0xff]  ;;  %v730_v4 = vpack.c.bf16 %v74_v2, %v73_v1  ;;  %v58_v5 = vld [vmem:[#allocation2 + $0x8] sm:$0xff]  ;;  %v75_v6 = vld [vmem:[#allocation2 + $0x90] sm:$0xff]  ;;  %vm564_vm1 = vcmask 1042434   ;;  %vm567_vm2 = vcmask 1043459   ;;  %vm570_vm3 = vcmask 1044484  }
  0x29   :  { %v76_v7 = vld [vmem:[#allocation2 + $0x98] sm:$0xff]  ;;  %v732_v8 = vpack.c.bf16 %v58_v5, %v57_v3  ;;  %v59_v10 = vld [vmem:[#allocation2 + $0x10] sm:$0xff]  ;;  %v77_v12 = vld [vmem:[#allocation2 + $0xa0] sm:$0xff]  ;;  %vm573_vm4 = vcmask 1045509   ;;  %vm576_vm5 = vcmask 1046534   ;;  %vm579_vm6 = vcmask 1047559  }
  0x2a   :  { %v734_v9 = vpack.c.bf16 %v76_v7, %v75_v6  ;;  %v60_v11 = vld [vmem:[#allocation2 + $0x18] sm:$0xff]  ;;  %731 = vmatprep.subr.bf16.mxu0 %v730_v4  ;;  %762 = vmatprep.subr.bf16.mxu1 %v730_v4  ;;  %v78_v13 = vld [vmem:[#allocation2 + $0xa8] sm:$0xff]  ;;  %v61_v16 = vld [vmem:[#allocation2 + $0x20] sm:$0xff]  ;;  %v918_v6 = vmov 1966171168  }
  0x2b   :  { %733 = vmatpush3.bf16.msra.mxu0 %v732_v8  ;;  %770 = vmatpush3.bf16.msra.mxu1 %v732_v8  ;;  %v736_v14 = vpack.c.bf16 %v60_v11, %v59_v10  ;;  %v738_v15 = vpack.c.bf16 %v78_v13, %v77_v12  ;;  %v62_v17 = vld [vmem:[#allocation2 + $0x28] sm:$0xff]  ;;  %v79_v18 = vld [vmem:[#allocation2 + $0xb0] sm:$0xff]  ;;  %v80_v19 = vld [vmem:[#allocation2 + $0xb8] sm:$0xff]  ;;  %v234_v7 = vunpack.c.l.s4 %v918_v6  ;;  %v236_v8 = vlaneseq }
  0x2c   :  { %735 = vmatprep.subr.bf16.mxu0 %v734_v9  ;;  %763 = vmatprep.subr.bf16.mxu1 %v734_v9  ;;  %v740_v20 = vpack.c.bf16 %v62_v17, %v61_v16  ;;  %v742_v21 = vpack.c.bf16 %v80_v19, %v79_v18  ;;  %v63_v22 = vld [vmem:[#allocation2 + $0x30] sm:$0xff]  ;;  %v64_v23 = vld [vmem:[#allocation2 + $0x38] sm:$0xff]  ;;  %v81_v24 = vld [vmem:[#allocation2 + $0xc0] sm:$0xff] }
  0x2d   :  { %v82_v25 = vld [vmem:[#allocation2 + $0xc8] sm:$0xff]  ;;  %v744_v28 = vpack.c.bf16 %v64_v23, %v63_v22  ;;  %v65_v30 = vld [vmem:[#allocation2 + $0x40] sm:$0xff]  ;;  %v83_v32 = vld [vmem:[#allocation2 + $0xd0] sm:$0xff]  ;;  %v235_v9 = vunpack.c.0.s8 %v234_v7  ;;  %v237_v10 = vshrl.u32 %v236_v8, 7 }
  0x2e   :  { %v44_v26 = vld [vmem:[#allocation5 + $0x8] sm:$0xff]  ;;  %v746_v29 = vpack.c.bf16 %v82_v25, %v81_v24  ;;  %v84_v33 = vld [vmem:[#allocation2 + $0xd8] sm:$0xff]  ;;  %v93_v34 = vld [vmem:[%s1128_s2 + $0x20] sm:$0xff] }
  0x2f   :  { %737 = vmatpush3.bf16.msra.mxu0 %v736_v14  ;;  %771 = vmatpush3.bf16.msra.mxu1 %v736_v14  ;;  %v52_v27 = vld [vmem:[#allocation5 + $0x48] sm:$0xff]  ;;  %v95_v36 = vld [vmem:[%s1128_s2 + $0x30] sm:$0xff]  ;;  %v750_v37 = vpack.c.bf16 %v84_v33, %v83_v32  ;;  %v68_v39 = vld [vmem:[#allocation2 + $0x58] sm:$0xff]  ;;  %v238_v16 = vsub.s32 %v235_v9, %v237_v10 }
  0x30   :  { %739 = vmatprep.subr.bf16.mxu0 %v738_v15  ;;  %764 = vmatprep.subr.bf16.mxu1 %v738_v15  ;;  %v66_v31 = vld [vmem:[#allocation2 + $0x48] sm:$0xff]  ;;  %v67_v38 = vld [vmem:[#allocation2 + $0x50] sm:$0xff]  ;;  %v85_v40 = vld [vmem:[#allocation2 + $0xe0] sm:$0xff] }
  0x31   :  { %195 = vmatprep.mubr.f32.mxu0 %v44_v26  ;;  %215 = vmatprep.mubr.f32.mxu1 %v52_v27  ;;  %v748_v35 = vpack.c.bf16 %v66_v31, %v65_v30  ;;  %v86_v41 = vld [vmem:[#allocation2 + $0xe8] sm:$0xff]  ;;  %v89_v43 = vld [vmem:[%s1128_s2] sm:$0xff]  ;;  %v752_v44 = vpack.c.bf16 %v68_v39, %v67_v38  ;;  %v87_v48 = vld [vmem:[#allocation2 + $0xf0] sm:$0xff] }
  0x32   :  { %118 = vperm.xlu0 %787, %v93_v34   ;;  %128 = vperm.xlu1 %788, %v95_v36   ;;  %v94_v42 = vld [vmem:[%s1128_s2 + $0x28] sm:$0xff]  ;;  %v754_v45 = vpack.c.bf16 %v86_v41, %v85_v40  ;;  %v69_v46 = vld [vmem:[#allocation2 + $0x60] sm:$0xff]  ;;  %v88_v49 = vld [vmem:[#allocation2 + $0xf8] sm:$0xff] }
  0x33   :  { %741 = vmatpush3.bf16.msra.mxu0 %v740_v20  ;;  %772 = vmatpush3.bf16.msra.mxu1 %v740_v20  ;;  %v70_v47 = vld [vmem:[#allocation2 + $0x68] sm:$0xff]  ;;  %v91_v51 = vld [vmem:[%s1128_s2 + $0x10] sm:$0xff]  ;;  %v758_v53 = vpack.c.bf16 %v88_v49, %v87_v48  ;;  %v72_v55 = vld [vmem:[#allocation2 + $0x78] sm:$0xff] }
  0x34   :  { %743 = vmatprep.subr.bf16.mxu0 %v742_v21  ;;  %765 = vmatprep.subr.bf16.mxu1 %v742_v21  ;;  %v90_v50 = vld [vmem:[%s1128_s2 + $0x8] sm:$0xff]  ;;  %v756_v52 = vpack.c.bf16 %v70_v47, %v69_v46  ;;  %v71_v54 = vld [vmem:[#allocation2 + $0x70] sm:$0xff]  ;;  %v92_v56 = vld [vmem:[%s1128_s2 + $0x18] sm:$0xff]  ;;  %s919_s2 = smov [#allocation7]  }
  0x35   :  { %v760_v57 = vpack.c.bf16 %v72_v55, %v71_v54  ;;  %v43_v58 = vld [vmem:[#allocation5] sm:$0xff]  ;;  %v46_v60 = vld [vmem:[#allocation5 + $0x18] sm:$0xff]  ;;  %v45_v62 = vld [vmem:[#allocation5 + $0x10] sm:$0xff]  ;;  %s667_s25 = sshll.u32 %s919_s2, 4  ;;  %s668_s25 = int_to_ptr.vmem [resolvable:$true] %s667_s25 }
  0x36   :  { %123 = vperm.xlu0 %787, %v94_v42   ;;  %98 = vperm.xlu1 %788, %v89_v43   ;;  %v51_v59 = vld [vmem:[#allocation5 + $0x40] sm:$0xff]  ;;  %v54_v61 = vld [vmem:[#allocation5 + $0x58] sm:$0xff]  ;;  %v53_v63 = vld [vmem:[#allocation5 + $0x50] sm:$0xff]  ;;  %s883_s26 = scalar_lea.vmem %s668_s25, 64  ;;  %p888_p3 = scmp.lt.s32.totalorder %s668_s25, %s668_s25 }
  0x37   :  { %745 = vmatpush3.bf16.msra.mxu0 %v744_v28  ;;  %773 = vmatpush3.bf16.msra.mxu1 %v744_v28  ;;  %v48_v0 = vld [vmem:[#allocation5 + $0x28] sm:$0xff]  ;;  %v47_v2 = vld [vmem:[#allocation5 + $0x20] sm:$0xff]  ;;  %v50_v4 = vld [vmem:[#allocation5 + $0x38] sm:$0xff]  ;;  %v989_v28 = vsub.s32 0, %v237_v10  ;;  %p884_p2 = scmp.ne.s32.totalorder %s668_s25, %s883_s26  ;;  %p889_p4 = scmp.lt.s32.totalorder %s883_s26, %s883_s26 }
  0x38   :  { %747 = vmatprep.subr.bf16.mxu0 %v746_v29  ;;  %766 = vmatprep.subr.bf16.mxu1 %v746_v29  ;;  %v56_v1 = vld [vmem:[#allocation5 + $0x68] sm:$0xff]  ;;  %v55_v3 = vld [vmem:[#allocation5 + $0x60] sm:$0xff]  ;;  %v49_v5 = vld [vmem:[#allocation5 + $0x30] sm:$0xff] }
  0x39   :  { %p890_p5 = por %p889_p4, %p888_p3 }
  0x3a   :  { %103 = vperm.xlu0 %787, %v90_v50   ;;  %108 = vperm.xlu1 %788, %v91_v51  }
  0x3b   :  { %749 = vmatpush3.bf16.msra.mxu0 %v748_v35  ;;  %774 = vmatpush3.bf16.msra.mxu1 %v748_v35  ;;  %p891_p6 = pnand %p890_p5, %p884_p2 }
  0x3c   :  { %751 = vmatprep.subr.bf16.mxu0 %v750_v37  ;;  %767 = vmatprep.subr.bf16.mxu1 %v750_v37 }
  0x3e   :  { %113 = vperm.xlu0 %787, %v92_v56  }
  0x3f   :  { %753 = vmatpush3.bf16.msra.mxu0 %v752_v44  ;;  %775 = vmatpush3.bf16.msra.mxu1 %v752_v44 }
  0x40   :  { %755 = vmatprep.subr.bf16.mxu0 %v754_v45  ;;  %768 = vmatprep.subr.bf16.mxu1 %v754_v45 }
  0x43   :  { %757 = vmatpush3.bf16.msra.mxu0 %v756_v52  ;;  %776 = vmatpush3.bf16.msra.mxu1 %v756_v52 }
  0x44   :  { %759 = vmatprep.subr.bf16.mxu0 %v758_v53  ;;  %769 = vmatprep.subr.bf16.mxu1 %v758_v53 }
  0x47   :  { %761 = vmatpush3.bf16.msra.mxu0 %v760_v57  ;;  %777 = vmatpush3.bf16.msra.mxu1 %v760_v57 }
  0x4a   :  { %196 = vmatmul.mubr.f32.vlgmr.msra.gmra.mrb[0].mxu0 %v43_v58  ;;  %216 = vmatmul.mubr.f32.vlgmr.msra.gmra.mrb[0].mxu1 %v51_v59 }
  0x4b   :  { %200 = vmatprep.mubr.f32.mxu0 %v46_v60  ;;  %220 = vmatprep.mubr.f32.mxu1 %v54_v61 }
  0x4e   :  { %201 = vmatmul.mubr.f32.gmra.mrb[2].mxu0 %v45_v62  ;;  %221 = vmatmul.mubr.f32.gmra.mrb[2].mxu1 %v53_v63 }
  0x4f   :  { %205 = vmatprep.mubr.f32.mxu0 %v48_v0  ;;  %225 = vmatprep.mubr.f32.mxu1 %v56_v1 }
  0x52   :  { %206 = vmatmul.mubr.f32.gmra.mrb[4].mxu0 %v47_v2  ;;  %226 = vmatmul.mubr.f32.gmra.mrb[4].mxu1 %v55_v3 }
  0x53   :  { %210 = vmatprep.mubr.f32.mxu0 %v50_v4 }
  0x56   :  { %211 = vmatmul.mubr.f32.gmra.mrb[6].mxu0 %v49_v5 }
  0xb1   :  { %v119_v18 = vpop.permute.xlu0 %118 }
  0xb5   :  { %v124_v36 = vpop.permute.xlu0 %123 }
 0x11d   :  { %v721_v11 = vpop.f32.mrb[0].mxu1  ;;  %v709_v12 = vpop.f32.mrb[0].mxu0 }
 0x11e   :  { %v722_v13 = vpop.f32.mrb[1].mxu1  ;;  %v710_v14 = vpop.f32.mrb[1].mxu0 }
 0x11f   :  { %v723_v15 = vadd.f32 %v722_v13, %v721_v11  ;;  %v985_v17 = vadd.f32 %v710_v14, %v709_v12 }
 0x121   :  { %v218_v19 = vadd.f32 %v723_v15, %v119_v18  ;;  %v712_v20 = vpop.f32.mrb[2].mxu0  ;;  %v724_v21 = vpop.f32.mrb[2].mxu1 }
 0x122   :  { %v713_v22 = vpop.f32.mrb[3].mxu0  ;;  %v725_v23 = vpop.f32.mrb[3].mxu1 }
 0x123   :  { %v232_v24 = vcombine.high %v218_v19, %v218_v19  ;;  %v239_v25 = vrot.slane %v218_v19, %v238_v16  ;;  %v987_v26 = vadd.f32 %v713_v22, %v712_v20  ;;  %v726_v27 = vadd.f32 %v725_v23, %v724_v21 }
 0x125   :  { %v246_v29 = vrot.slane %v232_v24, %v238_v16  ;;  %v247_v30 = vcombine.high %v239_v25, %v239_v25  ;;  %v255_v31 = vrot.slane %v239_v25, %v238_v16  ;;  %v715_v32 = vpop.f32.mrb[4].mxu0  ;;  %v727_v33 = vpop.f32.mrb[4].mxu1  ;;  %v223_v42 = vadd.f32 %v726_v27, %v124_v36 }
 0x126   :  { %v716_v34 = vpop.f32.mrb[5].mxu0  ;;  %v728_v35 = vpop.f32.mrb[5].mxu1 }
 0x127   :  { %v248_v37 = vcombine.high %v246_v29, %v246_v29  ;;  %v262_v38 = vrot.slane %v246_v29, %v238_v16  ;;  %v269_v39 = vrot.slane %v247_v30, %v238_v16  ;;  %v277_v40 = vcombine.high %v255_v31, %v255_v31 }
 0x128   :  { %v284_v41 = vrot.slane %v255_v31, %v989_v28  ;;  %v992_v43 = vadd.f32 %v716_v34, %v715_v32  ;;  %v994_v44 = vadd.f32 %v728_v35, %v727_v33 }
 0x129   :  { %v276_v45 = vrot.slane %v248_v37, %v238_v16  ;;  %v278_v46 = vcombine.high %v262_v38, %v262_v38  ;;  %v279_v47 = vcombine.high %v269_v39, %v269_v39  ;;  %v288_v48 = vrot.slane %v269_v39, %v989_v28  ;;  %v997_v49 = vpop.f32.mrb[6].mxu0 }
 0x12a   :  { %v292_v50 = vrot.slane %v277_v40, %v989_v28  ;;  %v300_v51 = vrot.slane %v262_v38, %v989_v28  ;;  %v1001_v52 = vmul.f32 %v284_v41, %v223_v42  ;;  %v1003_v53 = vpop.f32.mrb[7].mxu0 }
 0x12b   :  { %v280_v54 = vcombine.high %v276_v45, %v276_v45  ;;  %v296_v55 = vrot.slane %v279_v47, %v989_v28  ;;  %v304_v56 = vrot.slane %v276_v45, %v989_v28  ;;  %v308_v57 = vrot.slane %v278_v46, %v989_v28 }
 0x12c   :  { %v1008_v58 = vmul.f32 %v288_v48, %v223_v42  ;;  %v1010_v59 = vmul.f32 %v292_v50, %v223_v42  ;;  %v1012_v60 = vmul.f32 %v300_v51, %v223_v42  ;;  %v329_v61 = vrot.slane %v1001_v52, 4 }
 0x12d   :  { %v312_v62 = vrot.slane %v280_v54, %v989_v28  ;;  %v1016_v63 = vmul.f32 %v296_v55, %v223_v42  ;;  %v1018_v0 = vmul.f32 %v304_v56, %v223_v42  ;;  %v1020_v1 = vmul.f32 %v308_v57, %v223_v42 }
 0x12e   :  { %v330_v2 = vmax.f32 %v1001_v52, %v329_v61  ;;  %v335_v3 = vrot.slane %v1008_v58, 4  ;;  %v341_v4 = vrot.slane %v1010_v59, 4  ;;  %v353_v5 = vrot.slane %v1012_v60, 4 }
 0x12f   :  { %v1026_v6 = vmul.f32 %v312_v62, %v223_v42  ;;  %v347_v7 = vrot.slane %v1016_v63, 4  ;;  %v359_v8 = vrot.slane %v1018_v0, 4  ;;  %v365_v9 = vrot.slane %v1020_v1, 4 }
 0x130   :  { %v331_v10 = vrot.slane %v330_v2, 2  ;;  %v336_v11 = vmax.f32 %v1008_v58, %v335_v3  ;;  %v342_v12 = vmax.f32 %v1010_v59, %v341_v4  ;;  %v354_v13 = vmax.f32 %v1012_v60, %v353_v5 }
 0x131   :  { %v348_v14 = vmax.f32 %v1016_v63, %v347_v7  ;;  %v360_v15 = vmax.f32 %v1018_v0, %v359_v8  ;;  %v366_v16 = vmax.f32 %v1020_v1, %v365_v9  ;;  %v371_v18 = vrot.slane %v1026_v6, 4 }
 0x132   :  { %v332_v19 = vmax.f32 %v330_v2, %v331_v10  ;;  %v337_v20 = vrot.slane %v336_v11, 2  ;;  %v343_v21 = vrot.slane %v342_v12, 2  ;;  %v355_v22 = vrot.slane %v354_v13, 2 }
 0x133   :  { %v349_v23 = vrot.slane %v348_v14, 2  ;;  %v361_v24 = vrot.slane %v360_v15, 2  ;;  %v367_v25 = vrot.slane %v366_v16, 2  ;;  %v372_v27 = vmax.f32 %v1026_v6, %v371_v18 }
 0x134   :  { %v333_v29 = vrot.slane %v332_v19, 1  ;;  %v338_v30 = vmax.f32 %v336_v11, %v337_v20  ;;  %v344_v31 = vmax.f32 %v342_v12, %v343_v21  ;;  %v356_v32 = vmax.f32 %v354_v13, %v355_v22 }
 0x135   :  { %v350_v33 = vmax.f32 %v348_v14, %v349_v23  ;;  %v362_v34 = vmax.f32 %v360_v15, %v361_v24  ;;  %v368_v35 = vmax.f32 %v366_v16, %v367_v25  ;;  %v373_v36 = vrot.slane %v372_v27, 2 }
 0x136   :  { %v334_v37 = vmax.f32 %v332_v19, %v333_v29  ;;  %v339_v38 = vrot.slane %v338_v30, 1  ;;  %v345_v39 = vrot.slane %v344_v31, 1  ;;  %v357_v40 = vrot.slane %v356_v32, 1 }
 0x137   :  { %v351_v41 = vrot.slane %v350_v33, 1  ;;  %v363_v42 = vrot.slane %v362_v34, 1  ;;  %v369_v45 = vrot.slane %v368_v35, 1  ;;  %v374_v46 = vmax.f32 %v372_v27, %v373_v36 }
 0x138   :  { %v340_v47 = vmax.f32 %v338_v30, %v339_v38  ;;  %v346_v48 = vmax.f32 %v344_v31, %v345_v39  ;;  %v358_v50 = vmax.f32 %v356_v32, %v357_v40  ;;  %v377_v51 = vsub.f32 %v1001_v52, %v334_v37 }
 0x139   :  { %v352_v54 = vmax.f32 %v350_v33, %v351_v41  ;;  %v364_v55 = vmax.f32 %v362_v34, %v363_v42  ;;  %v370_v56 = vmax.f32 %v368_v35, %v369_v45  ;;  %v375_v57 = vrot.slane %v374_v46, 1 }
 0x13a   :  { %v378_v61 = vsub.f32 %v1008_v58, %v340_v47  ;;  %v379_v62 = vsub.f32 %v1010_v59, %v346_v48  ;;  %v381_v2 = vsub.f32 %v1012_v60, %v358_v50  ;;  %v385_v3 = vmul.f32 1.442695, %v377_v51 }
 0x13b   :  { %v376_v4 = vmax.f32 %v374_v46, %v375_v57  ;;  %v380_v5 = vsub.f32 %v1016_v63, %v352_v54  ;;  %v382_v7 = vsub.f32 %v1018_v0, %v364_v55  ;;  %v383_v8 = vsub.f32 %v1020_v1, %v370_v56 }
 0x13c   :  { %789 = vpow2.f32 %v385_v3  ;;  %v387_v52 = vmul.f32 1.442695, %v378_v61  ;;  %v389_v9 = vmul.f32 1.442695, %v379_v62  ;;  %v393_v12 = vmul.f32 1.442695, %v381_v2 }
 0x13d   :  { %v384_v10 = vsub.f32 %v1026_v6, %v376_v4  ;;  %v391_v11 = vmul.f32 1.442695, %v380_v5  ;;  %v395_v58 = vmul.f32 1.442695, %v382_v7  ;;  %v1049_v59 = vadd.f32 %v1003_v53, %v997_v49 }
 0x13e   :  { %791 = vpow2.f32 %v387_v52  ;;  %v397_v60 = vmul.f32 1.442695, %v383_v8 }
 0x13f   :  { %793 = vpow2.f32 %v389_v9  ;;  %v399_v63 = vmul.f32 1.442695, %v384_v10 }
 0x140   :  { %795 = vpow2.f32 %v391_v11 }
 0x141   :  { %797 = vpow2.f32 %v393_v12 }
 0x142   :  { %799 = vpow2.f32 %v395_v58 }
 0x143   :  { %801 = vpow2.f32 %v397_v60  ;;  %v129_v60 = vpop.permute.xlu1 %128 }
 0x144   :  { %803 = vpow2.f32 %v399_v63  ;;  %v228_v63 = vadd.f32 %v994_v44, %v129_v60 }
 0x146   :  { %v1051_v0 = vpop.eup %789 }
 0x147   :  { %v401_v1 = vrot.slane %v1051_v0, 4 }
 0x148   :  { %v1054_v6 = vpop.eup %791 }
 0x149   :  { %v1056_v13 = vpop.eup %793  ;;  %v402_v14 = vadd.f32 %v1051_v0, %v401_v1  ;;  %v407_v49 = vrot.slane %v1054_v6, 4 }
 0x14a   :  { %v1060_v53 = vpop.eup %795  ;;  %v413_v15 = vrot.slane %v1056_v13, 4 }
 0x14b   :  { %v1063_v16 = vpop.eup %797  ;;  %v403_v18 = vrot.slane %v402_v14, 2  ;;  %v408_v19 = vadd.f32 %v1054_v6, %v407_v49  ;;  %v419_v20 = vrot.slane %v1060_v53, 4 }
 0x14c   :  { %v1067_v21 = vpop.eup %799  ;;  %v414_v22 = vadd.f32 %v1056_v13, %v413_v15  ;;  %v425_v23 = vrot.slane %v1063_v16, 4 }
 0x14d   :  { %v1071_v24 = vpop.eup %801  ;;  %v404_v25 = vadd.f32 %v403_v18, %v402_v14  ;;  %v409_v27 = vrot.slane %v408_v19, 2  ;;  %v420_v29 = vadd.f32 %v1060_v53, %v419_v20  ;;  %v431_v30 = vrot.slane %v1067_v21, 4 }
 0x14e   :  { %v1075_v31 = vpop.eup %803  ;;  %v415_v32 = vrot.slane %v414_v22, 2  ;;  %v426_v33 = vadd.f32 %v1063_v16, %v425_v23  ;;  %v437_v34 = vrot.slane %v1071_v24, 4 }
 0x14f   :  { %v405_v35 = vrot.slane %v404_v25, 1  ;;  %v410_v36 = vadd.f32 %v409_v27, %v408_v19  ;;  %v421_v37 = vrot.slane %v420_v29, 2  ;;  %v432_v38 = vadd.f32 %v1067_v21, %v431_v30 }
 0x150   :  { %v416_v39 = vadd.f32 %v415_v32, %v414_v22  ;;  %v427_v40 = vrot.slane %v426_v33, 2  ;;  %v438_v41 = vadd.f32 %v1071_v24, %v437_v34  ;;  %v443_v42 = vrot.slane %v1075_v31, 4 }
 0x151   :  { %v406_v45 = vadd.f32 %v405_v35, %v404_v25  ;;  %v411_v46 = vrot.slane %v410_v36, 1  ;;  %v422_v47 = vadd.f32 %v421_v37, %v420_v29  ;;  %v433_v48 = vrot.slane %v432_v38, 2 }
 0x152   :  { %v417_v50 = vrot.slane %v416_v39, 1  ;;  %v428_v51 = vadd.f32 %v427_v40, %v426_v33  ;;  %v439_v54 = vrot.slane %v438_v41, 2  ;;  %v444_v55 = vadd.f32 %v1075_v31, %v443_v42 }
 0x153   :  { %v412_v56 = vadd.f32 %v411_v46, %v410_v36  ;;  %v423_v57 = vrot.slane %v422_v47, 1  ;;  %v434_v61 = vadd.f32 %v433_v48, %v432_v38  ;;  %805 = vrcp.f32 %v406_v45 }
 0x154   :  { %v418_v62 = vadd.f32 %v417_v50, %v416_v39  ;;  %v429_v2 = vrot.slane %v428_v51, 1  ;;  %v440_v3 = vadd.f32 %v439_v54, %v438_v41  ;;  %v445_v4 = vrot.slane %v444_v55, 2 }
 0x155   :  { %v424_v5 = vadd.f32 %v423_v57, %v422_v47  ;;  %v435_v7 = vrot.slane %v434_v61, 1  ;;  %807 = vrcp.f32 %v412_v56 }
 0x156   :  { %v430_v8 = vadd.f32 %v429_v2, %v428_v51  ;;  %809 = vrcp.f32 %v418_v62  ;;  %v441_v52 = vrot.slane %v440_v3, 1  ;;  %v446_v9 = vadd.f32 %v445_v4, %v444_v55 }
 0x157   :  { %v436_v10 = vadd.f32 %v435_v7, %v434_v61  ;;  %811 = vrcp.f32 %v424_v5 }
 0x158   :  { %813 = vrcp.f32 %v430_v8  ;;  %v442_v11 = vadd.f32 %v441_v52, %v440_v3  ;;  %v447_v12 = vrot.slane %v446_v9, 1 }
 0x159   :  { %815 = vrcp.f32 %v436_v10 }
 0x15a   :  { %v448_v58 = vadd.f32 %v447_v12, %v446_v9  ;;  %817 = vrcp.f32 %v442_v11 }
 0x15c   :  { %819 = vrcp.f32 %v448_v58 }
 0x15d   :  { %v806_v1 = vpop.eup %805 }
 0x15e   :  { %v450_v14 = vmul.f32 %v806_v1, %v1051_v0 }
 0x15f   :  { %v808_v49 = vpop.eup %807 }
 0x160   :  { %v810_v15 = vpop.eup %809  ;;  %v452_v18 = vmul.f32 %v808_v49, %v1054_v6  ;;  %v465_v19 = vmul.f32 %v450_v14, %v228_v63 }
 0x161   :  { %v812_v20 = vpop.eup %811  ;;  %v454_v22 = vmul.f32 %v810_v15, %v1056_v13 }
 0x162   :  { %v814_v23 = vpop.eup %813  ;;  %v456_v25 = vmul.f32 %v812_v20, %v1060_v53  ;;  %v466_v27 = vmul.f32 %v452_v18, %v228_v63  ;;  %v473_v29 = vrot.slane %v465_v19, 4 }
 0x163   :  { %v816_v30 = vpop.eup %815  ;;  %v458_v44 = vmul.f32 %v814_v23, %v1063_v16  ;;  %v467_v32 = vmul.f32 %v454_v22, %v228_v63 }
 0x164   :  { %v818_v33 = vpop.eup %817  ;;  %v460_v0 = vmul.f32 %v816_v30, %v1067_v21  ;;  %v468_v34 = vmul.f32 %v456_v25, %v228_v63  ;;  %v474_v35 = vadd.f32 %v473_v29, %v465_v19  ;;  %v479_v36 = vrot.slane %v466_v27, 4 }
 0x165   :  { %v469_v6 = vmul.f32 %v458_v44, %v228_v63  ;;  %v485_v37 = vrot.slane %v467_v32, 4  ;;  %v462_v38 = vmul.f32 %v818_v33, %v1071_v24 }
 0x166   :  { %v820_v13 = vpop.eup %819  ;;  %v470_v39 = vmul.f32 %v460_v0, %v228_v63  ;;  %v475_v40 = vrot.slane %v474_v35, 2  ;;  %v480_v53 = vadd.f32 %v479_v36, %v466_v27  ;;  %v491_v41 = vrot.slane %v468_v34, 4 }
 0x167   :  { %v497_v42 = vrot.slane %v469_v6, 4  ;;  %v464_v45 = vmul.f32 %v820_v13, %v1075_v31  ;;  %v471_v16 = vmul.f32 %v462_v38, %v228_v63  ;;  %v486_v46 = vadd.f32 %v485_v37, %v467_v32 }
 0x168   :  { %v476_v47 = vadd.f32 %v475_v40, %v474_v35  ;;  %v481_v48 = vrot.slane %v480_v53, 2  ;;  %v492_v21 = vadd.f32 %v491_v41, %v468_v34  ;;  %v503_v50 = vrot.slane %v470_v39, 4 }
 0x169   :  { %v472_v51 = vmul.f32 %v464_v45, %v228_v63  ;;  %v487_v54 = vrot.slane %v486_v46, 2  ;;  %v498_v55 = vadd.f32 %v497_v42, %v469_v6  ;;  %v509_v56 = vrot.slane %v471_v16, 4 }
 0x16a   :  { %v482_v57 = vadd.f32 %v481_v48, %v480_v53  ;;  %v493_v24 = vrot.slane %v492_v21, 2  ;;  %v504_v61 = vadd.f32 %v503_v50, %v470_v39  ;;  %v477_v5 = vrot.slane %v476_v47, 1 }
 0x16b   :  { %v488_v62 = vadd.f32 %v487_v54, %v486_v46  ;;  %v499_v2 = vrot.slane %v498_v55, 2  ;;  %v510_v3 = vadd.f32 %v509_v56, %v471_v16  ;;  %v515_v4 = vrot.slane %v472_v51, 4 }
 0x16c   :  { %v505_v7 = vrot.slane %v504_v61, 2  ;;  %v494_v31 = vadd.f32 %v493_v24, %v492_v21  ;;  %v483_v10 = vrot.slane %v482_v57, 1  ;;  %v478_v1 = vadd.f32 %v477_v5, %v476_v47 }
 0x16d   :  { %v500_v8 = vadd.f32 %v499_v2, %v498_v55  ;;  %v511_v52 = vrot.slane %v510_v3, 2  ;;  %v516_v9 = vadd.f32 %v515_v4, %v472_v51  ;;  %v489_v12 = vrot.slane %v488_v62, 1 }
 0x16e   :  { %v506_v11 = vadd.f32 %v505_v7, %v504_v61  ;;  %v495_v49 = vrot.slane %v494_v31, 1  ;;  %v484_v20 = vadd.f32 %v483_v10, %v482_v57 }
 0x16f   :  { %v501_v58 = vrot.slane %v500_v8, 1  ;;  %v512_v60 = vadd.f32 %v511_v52, %v510_v3  ;;  %v517_v63 = vrot.slane %v516_v9, 2  ;;  %v490_v23 = vadd.f32 %v489_v12, %v488_v62 }
 0x170   :  { %v507_v14 = vrot.slane %v506_v11, 1  ;;  %v496_v44 = vadd.f32 %v495_v49, %v494_v31 }
 0x171   :  { %v502_v15 = vadd.f32 %v501_v58, %v500_v8  ;;  %v513_v18 = vrot.slane %v512_v60, 1  ;;  %v518_v19 = vadd.f32 %v517_v63, %v516_v9 }
 0x172   :  { %v508_v22 = vadd.f32 %v507_v14, %v506_v11 }
 0x173   :  { %v514_v25 = vadd.f32 %v513_v18, %v512_v60  ;;  %v519_v27 = vrot.slane %v518_v19, 1  ;;  %v521_v29 = vmax.f32 %v478_v1, %v502_v15 }
 0x174   :  { %v522_v30 = vmax.f32 %v484_v20, %v508_v22 }
 0x175   :  { %v520_v32 = vadd.f32 %v519_v27, %v518_v19  ;;  %v523_v33 = vmax.f32 %v490_v23, %v514_v25 }
 0x176   :  { %v525_v0 = vmax.f32 %v521_v29, %v522_v30 }
 0x177   :  { %v524_v34 = vmax.f32 %v496_v44, %v520_v32 }
 0x179   :  { %v526_v35 = vmax.f32 %v523_v33, %v524_v34 }
 0x17b   :  { %v527_v36 = vmax.f32 %v525_v0, %v526_v35  ;;  %v104_v0 = vpop.permute.xlu0 %103 }
 0x17d   :  { %v528_v6 = vsub.f32 %v478_v1, %v527_v36  ;;  %v529_v37 = vsub.f32 %v484_v20, %v527_v36  ;;  %v530_v38 = vsub.f32 %v490_v23, %v527_v36  ;;  %v531_v13 = vsub.f32 %v496_v44, %v527_v36 }
 0x17e   :  { %v532_v39 = vsub.f32 %v502_v15, %v527_v36  ;;  %v533_v40 = vsub.f32 %v508_v22, %v527_v36  ;;  %v534_v53 = vsub.f32 %v514_v25, %v527_v36  ;;  %v535_v41 = vsub.f32 %v520_v32, %v527_v36  ;;  %v99_v22 = vpop.permute.xlu1 %98 }
 0x17f   :  { %v536_v42 = vmul.f32 1.442695, %v528_v6  ;;  %v538_v45 = vmul.f32 1.442695, %v529_v37  ;;  %v540_v16 = vmul.f32 1.442695, %v530_v38 }
 0x180   :  { %v542_v46 = vmul.f32 1.442695, %v531_v13  ;;  %v544_v47 = vmul.f32 1.442695, %v532_v39  ;;  %v546_v48 = vmul.f32 1.442695, %v533_v40 }
 0x181   :  { %821 = vpow2.f32 %v536_v42  ;;  %v548_v21 = vmul.f32 1.442695, %v534_v53  ;;  %v550_v50 = vmul.f32 1.442695, %v535_v41  ;;  %v114_v41 = vpop.permute.xlu0 %113  ;;  %v198_v42 = vadd.f32 %v985_v17, %v99_v22 }
 0x182   :  { %823 = vpow2.f32 %v538_v45  ;;  %v109_v39 = vpop.permute.xlu1 %108 }
 0x183   :  { %825 = vpow2.f32 %v540_v16 }
 0x184   :  { %827 = vpow2.f32 %v542_v46  ;;  %v203_v46 = vadd.f32 %v987_v26, %v104_v0 }
 0x185   :  { %829 = vpow2.f32 %v544_v47  ;;  %v213_v47 = vadd.f32 %v1049_v59, %v114_v41 }
 0x186   :  { %831 = vpow2.f32 %v546_v48 }
 0x187   :  { %833 = vpow2.f32 %v548_v21  ;;  %v208_v21 = vadd.f32 %v992_v43, %v109_v39 }
 0x188   :  { %835 = vpow2.f32 %v550_v50 }
 0x18b   :  { %v822_v51 = vpop.eup %821 }
 0x18c   :  { %v824_v54 = vpop.eup %823 }
 0x18d   :  { %v826_v55 = vpop.eup %825  ;;  %v560_v56 = vrot.slane %v824_v54, 7 }
 0x18e   :  { %v828_v57 = vpop.eup %827  ;;  %v563_v24 = vrot.slane %v826_v55, 6 }
 0x18f   :  { %v830_v61 = vpop.eup %829  ;;  %v562_v62 = vsel %vm561_vm0, %v560_v56, %v822_v51  ;;  %v566_v2 = vrot.slane %v828_v57, 5 }
 0x190   :  { %v832_v3 = vpop.eup %831  ;;  %v565_v4 = vsel %vm564_vm1, %v563_v24, %v562_v62  ;;  %v569_v5 = vrot.slane %v830_v61, 4 }
 0x191   :  { %v834_v7 = vpop.eup %833  ;;  %v568_v31 = vsel %vm567_vm2, %v566_v2, %v565_v4  ;;  %v572_v8 = vrot.slane %v832_v3, 3 }
 0x192   :  { %v836_v52 = vpop.eup %835  ;;  %v571_v9 = vsel %vm570_vm3, %v569_v5, %v568_v31  ;;  %v575_v10 = vrot.slane %v834_v7, 2 }
 0x193   :  { %v574_v11 = vsel %vm573_vm4, %v572_v8, %v571_v9  ;;  %v578_v12 = vrot.slane %v836_v52, 1 }
 0x194   :  { %v577_v58 = vsel %vm576_vm5, %v575_v10, %v574_v11 }
 0x195   :  { %v580_v60 = vsel %vm579_vm6, %v578_v12, %v577_v58 }
 0x196   :  { %v582_v63 = vrot.slane %v580_v60, 4 }
 0x198   :  { %v583_v1 = vadd.f32 %v582_v63, %v580_v60 }
 0x19a   :  { %v584_v14 = vrot.slane %v583_v1, 2 }
 0x19c   :  { %v585_v49 = vadd.f32 %v584_v14, %v583_v1 }
 0x19e   :  { %v586_v15 = vrot.slane %v585_v49, 1 }
 0x1a0   :  { %v587_v18 = vadd.f32 %v586_v15, %v585_v49 }
 0x1a2   :  { %v591_v19 = vrot.slane %v587_v18, %v989_v28 }
 0x1a4   :  { %837 = vrcp.f32 %v591_v19 }
 0x1ae   :  { %v838_v20 = vpop.eup %837 }
 0x1af   :  { %v593_v23 = vmul.f32 %v838_v20, %v822_v51  ;;  %v594_v25 = vmul.f32 %v838_v20, %v824_v54  ;;  %v595_v27 = vmul.f32 %v838_v20, %v826_v55  ;;  %v596_v29 = vmul.f32 %v838_v20, %v828_v57 }
 0x1b0   :  { %v597_v30 = vmul.f32 %v838_v20, %v830_v61  ;;  %v598_v44 = vmul.f32 %v838_v20, %v832_v3  ;;  %v599_v32 = vmul.f32 %v838_v20, %v834_v7  ;;  %v600_v33 = vmul.f32 %v838_v20, %v836_v52 }
 0x1b1   :  { %v609_v34 = vrot.slane %v594_v25, 7  ;;  %v611_v35 = vrot.slane %v595_v27, 6  ;;  %v613_v6 = vrot.slane %v596_v29, 5 }
 0x1b2   :  { %v615_v28 = vrot.slane %v597_v30, 4  ;;  %v617_v13 = vrot.slane %v598_v44, 3  ;;  %v619_v53 = vrot.slane %v599_v32, 2  ;;  %v621_v16 = vrot.slane %v600_v33, 1 }
 0x1b3   :  { %v610_v36 = vsel %vm561_vm0, %v609_v34, %v593_v23 }
 0x1b4   :  { %v612_v37 = vsel %vm564_vm1, %v611_v35, %v610_v36 }
 0x1b5   :  { %v614_v38 = vsel %vm567_vm2, %v613_v6, %v612_v37 }
 0x1b6   :  { %v616_v40 = vsel %vm570_vm3, %v615_v28, %v614_v38 }
 0x1b7   :  { %v618_v45 = vsel %vm573_vm4, %v617_v13, %v616_v40 }
 0x1b8   :  { %v620_v48 = vsel %vm576_vm5, %v619_v53, %v618_v45 }
 0x1b9   :  { %v622_v50 = vsel %vm579_vm6, %v621_v16, %v620_v48 }
 0x1ba   :  { %v624_v51 = vmul.f32 %v622_v50, %v198_v42  ;;  %v625_v54 = vmul.f32 %v622_v50, %v203_v46  ;;  %v627_v55 = vmul.f32 %v622_v50, %v213_v47  ;;  %v626_v56 = vmul.f32 %v622_v50, %v208_v21 }
 0x1bc   :  { %v628_v57 = vrot.slane %v624_v51, 4  ;;  %v634_v24 = vrot.slane %v625_v54, 4  ;;  %v646_v17 = vrot.slane %v627_v55, 4  ;;  %v640_v61 = vrot.slane %v626_v56, 4 }
 0x1be   :  { %v629_v62 = vadd.f32 %v628_v57, %v624_v51  ;;  %v635_v2 = vadd.f32 %v634_v24, %v625_v54  ;;  %v641_v3 = vadd.f32 %v640_v61, %v626_v56  ;;  %v647_v26 = vadd.f32 %v646_v17, %v627_v55 }
 0x1c0   :  { %v630_v4 = vrot.slane %v629_v62, 2  ;;  %v636_v59 = vrot.slane %v635_v2, 2  ;;  %v642_v5 = vrot.slane %v641_v3, 2  ;;  %v648_v7 = vrot.slane %v647_v26, 2 }
 0x1c2   :  { %v631_v31 = vadd.f32 %v630_v4, %v629_v62  ;;  %v643_v43 = vadd.f32 %v642_v5, %v641_v3  ;;  %v637_v8 = vadd.f32 %v636_v59, %v635_v2  ;;  %v649_v52 = vadd.f32 %v648_v7, %v647_v26 }
 0x1c4   :  { %v632_v9 = vrot.slane %v631_v31, 1  ;;  %v644_v10 = vrot.slane %v643_v43, 1  ;;  %v638_v11 = vrot.slane %v637_v8, 1  ;;  %v650_v12 = vrot.slane %v649_v52, 1 }
 0x1c6   :  { %v633_v58 = vadd.f32 %v632_v9, %v631_v31  ;;  %v645_v60 = vadd.f32 %v644_v10, %v643_v43  ;;  %v639_v63 = vadd.f32 %v638_v11, %v637_v8  ;;  %v651_v1 = vadd.f32 %v650_v12, %v649_v52 }
 0x1c8   :  { %v656_v14 = vsel %vm561_vm0, %v639_v63, %v633_v58 }
 0x1c9   :  { %v657_v49 = vsel %vm564_vm1, %v645_v60, %v656_v14 }
 0x1ca   :  { %v658_v15 = vsel %vm567_vm2, %v651_v1, %v657_v49 }
 0x1cb   :  { %660 = vst [vmem:[#allocation7] sm:$0xf] %v658_v15 }
 0x1cc   :  { %894 = shalt.err (!%p891_p6)
}
 0x1cd   :  { %s895_s29 = scalar_lea.hbm %s1129_s3, 64 }
 0x1ce   :  { %p896_p7 = scmp.ne.s32.totalorder %s1129_s3, %s895_s29  ;;  %p899_p8 = scmp.lt.u32.totalorder %s895_s29, %s1129_s3 }
 0x1d0   :  { %p901_p9 = pnand %p899_p8, %p896_p7 }
 0x1d2   :  { %904 = shalt.err (!%p901_p9)
}
 0x1d3   :  { %670 = dma.vmem_to_hbm [thread:$0]  %s668_s25, 64, %s1129_s3, [#allocation4]  }
 0x1d4   :  { %909 = dma.done.wait [#allocation4], 64  }
 0x1d5   :  { %910 = vsyncadd [#allocation4], 4294967232 }
 0x1d6   :  { %674 = vsyncpa [#allocation3], 1 }
 0x1d7   :  { %675 = vsyncpa [#allocation6], 1 }
 0x1d8   :  { %676 = vsyncpa [#allocation4], 1 }

</bundles_post_ra>
